<compile_context>
chip_gen: v7x
topology: tpu7x:2x2x1
jax: 0.10.0
libtpu: 0.0.40
codegen_flags: <defaults>
</compile_context>

<pallas_src>
import math

import jax
import jax.numpy as jnp
from jax import lax
from jax.experimental import pallas as pl
from jax.experimental.pallas import tpu as pltpu


def _attention_head_kernel(x_ref, w_ref, o_ref):
    # x_ref: (B*T, C) flattened tokens, already in the MXU dtype (bf16 or f32)
    # w_ref: (C, 3H)  fused [Wk | Wq | Wv], same dtype as x_ref
    # o_ref: (B, T, H) output in the caller's dtype (f32)
    B, T, H = o_ref.shape
    C = x_ref.shape[-1]
    scale = float(C) ** 0.5          # matches PyTorch: wei = q @ k^T * C**0.5
    mxu_dtype = x_ref.dtype          # operands arrive pre-cast from the wrapper

    # One fused QKV projection for every (batch, token): (B*T, C) @ (C, 3H)
    # on the MXU, accumulating in f32.
    qkv = jnp.dot(x_ref[...], w_ref[...],
                  preferred_element_type=jnp.float32)       # (B*T, 3H) f32
    qkv = qkv.reshape(B, T, 3 * H)                           # sublane-aligned split (T == 8)

    # Lane slices inside one vreg at H=16 — XLU has slack here; at real H make
    # each of K/Q/V start on a 128-lane boundary.
    k = qkv[..., 0:H]                                        # (B, T, H) f32
    q = qkv[..., H:2 * H] * scale                            # scale folded into q (f32)
    v = qkv[..., 2 * H:3 * H]                                # (B, T, H) f32

    # scores = q @ k^T, batched over B, contracting the head dim — no explicit
    # k transpose / relayout.  MXU operands in mxu_dtype, f32 accumulation.
    wei = lax.dot_general(
        q.astype(mxu_dtype), k.astype(mxu_dtype),
        dimension_numbers=(((2,), (2,)), ((0,), (0,))),
        preferred_element_type=jnp.float32,
    )                                                        # (B, T, T) f32

    # Causal mask (2-D+ iota as required on TPU).  -inf is safe: every causal
    # row has at least one unmasked entry.
    row = lax.broadcasted_iota(jnp.int32, (B, T, T), 1)
    col = lax.broadcasted_iota(jnp.int32, (B, T, T), 2)
    wei = jnp.where(col <= row, wei, -jnp.inf)

    # Numerically stable softmax, entirely in f32 on the VPU/EUP; exact
    # division (no approx reciprocal) for fidelity to the PyTorch module.
    wei = wei - jnp.max(wei, axis=-1, keepdims=True)
    p = jnp.exp(wei)
    p = p / jnp.sum(p, axis=-1, keepdims=True)

    # dropout: identity (eval mode)

    # out = p @ v, batched over B, f32 accumulation; single full store.
    out = lax.dot_general(
        p.astype(mxu_dtype), v.astype(mxu_dtype),
        dimension_numbers=(((2,), (1,)), ((0,), (0,))),
        preferred_element_type=jnp.float32,
    )                                                        # (B, T, H) f32
    o_ref[...] = out.astype(o_ref.dtype)


def fuse_qkv_weights(wk, wq, wv):
    """Fuse the three (C, H) projection weights into one (C, 3H) operand.

    Do this ONCE at parameter-setup time (hoisted out of the per-call path so
    the per-invocation weight traffic really is a single DMA).
    """
    return jnp.concatenate([wk, wq, wv], axis=1)


def attention_head(x, w_qkv, *, mxu_dtype=jnp.bfloat16):
    """x: (B, T, C); w_qkv: (C, 3H) pre-fused [Wk|Wq|Wv]. Returns (B, T, H) in x.dtype.

    mxu_dtype=bf16 (default) is the native-peak MXU path on v6e/v7x and 2x the
    f32 rate on v5e, and halves the x / weight DMA bytes; softmax stays f32.
    Use mxu_dtype=float32 for an exact-precision path.
    """
    B, T, C = x.shape
    H = w_qkv.shape[1] // 3

    x2d = x.reshape(B * T, C).astype(mxu_dtype)
    w = w_qkv.astype(mxu_dtype)

    # Single gridless invocation: whole arrays live in VMEM for the call.
    # (At real shapes this becomes a KV-tiled grid with a "parallel" axis.)
    return pl.pallas_call(
        _attention_head_kernel,
        out_shape=jax.ShapeDtypeStruct((B, T, H), x.dtype),
        in_specs=[
            pl.BlockSpec(memory_space=pltpu.MemorySpace.VMEM),  # x2d
            pl.BlockSpec(memory_space=pltpu.MemorySpace.VMEM),  # w_qkv
        ],
        out_specs=pl.BlockSpec(memory_space=pltpu.MemorySpace.VMEM),
    )(x2d, w)


def reference_attention_head(x, wk, wq, wv):
    """Pure-JAX reference matching the PyTorch forward (eval mode), full f32."""
    B, T, C = x.shape
    hp = jax.lax.Precision.HIGHEST
    k = jnp.einsum("btc,ch->bth", x, wk, precision=hp)
    q = jnp.einsum("btc,ch->bth", x, wq, precision=hp)
    v = jnp.einsum("btc,ch->bth", x, wv, precision=hp)
    wei = jnp.einsum("bth,bsh->bts", q, k, precision=hp) * (C ** 0.5)
    mask = jnp.tril(jnp.ones((T, T), dtype=bool))
    wei = jnp.where(mask, wei, -jnp.inf)
    wei = jax.nn.softmax(wei, axis=-1)
    return jnp.einsum("bts,bsh->bth", wei, v, precision=hp)


if __name__ == "__main__":
    # Config: block_size=8, n_embed=32, head_size=16, attn_dropout=0.0 (eval)
    B, T, C, H = 2, 8, 32, 16

    key = jax.random.PRNGKey(0)
    kx, kk, kq, kv = jax.random.split(key, 4)

    x = jax.random.normal(kx, (B, T, C), dtype=jnp.float32)

    # nn.Linear(n_embed, head_size, bias=False): weight (H, C), init
    # uniform(-1/sqrt(C), 1/sqrt(C)); stored transposed as (C, H).
    bound = 1.0 / math.sqrt(C)
    wk = jax.random.uniform(kk, (C, H), minval=-bound, maxval=bound, dtype=jnp.float32)
    wq = jax.random.uniform(kq, (C, H), minval=-bound, maxval=bound, dtype=jnp.float32)
    wv = jax.random.uniform(kv, (C, H), minval=-bound, maxval=bound, dtype=jnp.float32)

    # Weight fusion hoisted out of the call path (done once).
    w_qkv = fuse_qkv_weights(wk, wq, wv)

    ref = reference_attention_head(x, wk, wq, wv)

    # Default (bf16 MXU) path — the performance configuration.
    out_bf16 = attention_head(x, w_qkv)                       # mxu_dtype=bf16
    out_bf16 = jax.block_until_ready(out_bf16)
    assert out_bf16.shape == (B, T, H), out_bf16.shape
    assert jnp.allclose(out_bf16, ref, atol=5e-2, rtol=5e-2), float(
        jnp.max(jnp.abs(out_bf16 - ref))
    )

    # Exact-precision path — tight fidelity check against the PyTorch semantics.
    out_f32 = attention_head(x, w_qkv, mxu_dtype=jnp.float32)
    out_f32 = jax.block_until_ready(out_f32)
    assert jnp.allclose(out_f32, ref, atol=2e-3, rtol=2e-3), float(
        jnp.max(jnp.abs(out_f32 - ref))
    )

    print("KERNEL_OK")
</pallas_src>

<mosaic_0001>
module attributes {stable_mosaic.version = 11 : i64} {
  func.func @_attention_head_kernel(%arg0: memref<16x32xbf16, #tpu.memory_space<vmem>>, %arg1: memref<32x48xbf16, #tpu.memory_space<vmem>>, %arg2: memref<2x8x16xf32, #tpu.memory_space<vmem>>) attributes {dimension_semantics = [], scalar_prefetch = 0 : i64, scratch_operands = 0 : i64, tpu.core_type = #tpu.core_type<tc>} {
    %c0 = arith.constant 0 : index
    %c0_0 = arith.constant 0 : index
    %0 = vector.load %arg0[%c0, %c0_0] : memref<16x32xbf16, #tpu.memory_space<vmem>>, vector<16x32xbf16>
    %c0_1 = arith.constant 0 : index
    %c0_2 = arith.constant 0 : index
    %1 = vector.load %arg1[%c0_1, %c0_2] : memref<32x48xbf16, #tpu.memory_space<vmem>>, vector<32x48xbf16>
    %cst = arith.constant dense<0.000000e+00> : vector<16x48xf32>
    %2 = tpu.matmul %0, %1, %cst {dimension_numbers = #tpu.dot_dimension_numbers<[1], [0], [0], [1], [0, 0, 1, 1], [], []>} : vector<16x32xbf16>, vector<32x48xbf16>, vector<16x48xf32> -> vector<16x48xf32>
    %3 = vector.shape_cast %2 : vector<16x48xf32> to vector<2x8x48xf32>
    %4 = vector.extract_strided_slice %3 {offsets = [0, 0, 0], sizes = [2, 8, 16], strides = [1, 1, 1]} : vector<2x8x48xf32> to vector<2x8x16xf32>
    %5 = vector.extract_strided_slice %3 {offsets = [0, 0, 16], sizes = [2, 8, 16], strides = [1, 1, 1]} : vector<2x8x48xf32> to vector<2x8x16xf32>
    %cst_3 = arith.constant 5.65685415 : f32
    %6 = vector.broadcast %cst_3 : f32 to vector<2x8x16xf32>
    %7 = arith.mulf %5, %6 : vector<2x8x16xf32>
    %8 = vector.extract_strided_slice %3 {offsets = [0, 0, 32], sizes = [2, 8, 16], strides = [1, 1, 1]} : vector<2x8x48xf32> to vector<2x8x16xf32>
    %9 = arith.truncf %7 : vector<2x8x16xf32> to vector<2x8x16xbf16>
    %10 = arith.truncf %4 : vector<2x8x16xf32> to vector<2x8x16xbf16>
    %cst_4 = arith.constant dense<0.000000e+00> : vector<2x8x8xf32>
    %11 = tpu.matmul %9, %10, %cst_4 {dimension_numbers = #tpu.dot_dimension_numbers<[2], [2], [1], [1], [0, 0, 0, 1, 1, 1], [0], [0]>} : vector<2x8x16xbf16>, vector<2x8x16xbf16>, vector<2x8x8xf32> -> vector<2x8x8xf32>
    %12 = tpu.iota {dimensions = array<i32: 1>} : vector<2x8x8xi32>
    %13 = tpu.iota {dimensions = array<i32: 2>} : vector<2x8x8xi32>
    %14 = arith.cmpi sle, %13, %12 : vector<2x8x8xi32>
    %cst_5 = arith.constant 0xFF800000 : f32
    %15 = vector.broadcast %cst_5 : f32 to vector<2x8x8xf32>
    %16 = arith.select %14, %11, %15 : vector<2x8x8xi1>, vector<2x8x8xf32>
    %cst_6 = arith.constant dense<0xFF800000> : vector<2x8xf32>
    %17 = vector.multi_reduction <maximumf>, %16, %cst_6 [2] : vector<2x8x8xf32> to vector<2x8xf32>
    %18 = vector.shape_cast %17 : vector<2x8xf32> to vector<2x8x1xf32>
    %19 = vector.broadcast %18 : vector<2x8x1xf32> to vector<2x8x8xf32>
    %20 = arith.subf %16, %19 : vector<2x8x8xf32>
    %21 = math.exp %20 : vector<2x8x8xf32>
    %cst_7 = arith.constant dense<0.000000e+00> : vector<2x8xf32>
    %22 = vector.multi_reduction <add>, %21, %cst_7 [2] : vector<2x8x8xf32> to vector<2x8xf32>
    %23 = vector.shape_cast %22 : vector<2x8xf32> to vector<2x8x1xf32>
    %24 = vector.broadcast %23 : vector<2x8x1xf32> to vector<2x8x8xf32>
    %25 = arith.divf %21, %24 : vector<2x8x8xf32>
    %26 = arith.truncf %25 : vector<2x8x8xf32> to vector<2x8x8xbf16>
    %27 = arith.truncf %8 : vector<2x8x16xf32> to vector<2x8x16xbf16>
    %cst_8 = arith.constant dense<0.000000e+00> : vector<2x8x16xf32>
    %28 = tpu.matmul %26, %27, %cst_8 {dimension_numbers = #tpu.dot_dimension_numbers<[2], [1], [1], [2], [0, 0, 0, 1, 1, 2], [0], [0]>} : vector<2x8x8xbf16>, vector<2x8x16xbf16>, vector<2x8x16xf32> -> vector<2x8x16xf32>
    %c0_9 = arith.constant 0 : index
    %c0_10 = arith.constant 0 : index
    %c0_11 = arith.constant 0 : index
    %29 = vector.load %arg2[%c0_9, %c0_10, %c0_11] : memref<2x8x16xf32, #tpu.memory_space<vmem>>, vector<2x8x16xf32>
    tpu.vector_store %arg2[%c0_9, %c0_10, %c0_11], %28 {strides = array<i32>} : memref<2x8x16xf32, #tpu.memory_space<vmem>>, vector<2x8x16xf32>,
    return
  }
}

</mosaic_0001>

<bundles_post_ra>
// kernel: tpu_custom_call.1
= control target key start
LH: loop header
LB: loop body
LE: loop exit
PB: predicated region body
PF: predicated region fallthrough
CT: control target
= control target key end

     0   :  { %7 = vsyncpa [#allocation3], 0  ;;  %s591_s0 = inlined_call_operand.hbm [shape: bf16[16,32], index: 0, kind: input, shape index: {}]   ;;  %s592_s1 = inlined_call_operand.hbm [shape: bf16[32,48], index: 1, kind: input, shape index: {}]   ;;  %s593_s2 = inlined_call_operand.hbm [shape: f32[2,8,16], index: 2, kind: output, shape index: {}]  }
   0x1   :  { %8 = vsyncpa [#allocation6], 0 }
   0x2   :  { %9 = vsyncpa [#allocation4], 0  ;;  %s510_s9 = smov [#allocation2]   ;;  %s438_s13 = scalar_lea.hbm %s591_s0, 128 }
   0x3   :  { %s15_s10 = sshll.u32 %s510_s9, 4  ;;  %p439_p0 = scmp.ne.s32.totalorder %s591_s0, %s438_s13  ;;  %s16_s10 = int_to_ptr.vmem [resolvable:$true] %s15_s10 }
   0x4   :  { %p442_p1 = scmp.lt.u32.totalorder %s438_s13, %s591_s0 }
   0x6   :  { %p444_p2 = pnand %p442_p1, %p439_p0 }
   0x8   :  { %447 = shalt.err (!%p444_p2)
}
   0x9   :  { %s448_s18 = scalar_lea.vmem %s16_s10, 128  ;;  %p453_p4 = scmp.lt.s32.totalorder %s16_s10, %s16_s10 }
   0xa   :  { %p449_p3 = scmp.ne.s32.totalorder %s16_s10, %s448_s18  ;;  %p454_p5 = scmp.lt.s32.totalorder %s448_s18, %s448_s18 }
   0xc   :  { %p455_p6 = por %p454_p5, %p453_p4 }
   0xe   :  { %p456_p7 = pnand %p455_p6, %p449_p3 }
  0x10   :  { %459 = shalt.err (!%p456_p7)
}
  0x11   :  { %s511_s19 = smov 64   ;;  %s512_s20 = smov 4  }
  0x12   :  { %21 = dma.hbm_to_vmem [thread:$0]  %s591_s0, 128, %s16_s10, [#allocation3], %s511_s19, %s511_s19, %s512_s20  }
  0x13   :  { %s513_s23 = smov [#allocation5]   ;;  %s460_s27 = scalar_lea.hbm %s592_s1, 256 }
  0x14   :  { %s27_s24 = sshll.u32 %s513_s23, 4  ;;  %p461_p8 = scmp.ne.s32.totalorder %s592_s1, %s460_s27  ;;  %s28_s24 = int_to_ptr.vmem [resolvable:$true] %s27_s24 }
  0x15   :  { %p464_p9 = scmp.lt.u32.totalorder %s460_s27, %s592_s1 }
  0x17   :  { %p466_p10 = pnand %p464_p9, %p461_p8 }
  0x19   :  { %469 = shalt.err (!%p466_p10)
}
  0x1a   :  { %s470_s4 = scalar_lea.vmem %s28_s24, 256  ;;  %p475_p12 = scmp.lt.s32.totalorder %s28_s24, %s28_s24 }
  0x1b   :  { %p471_p11 = scmp.ne.s32.totalorder %s28_s24, %s470_s4  ;;  %p476_p13 = scmp.lt.s32.totalorder %s470_s4, %s470_s4 }
  0x1d   :  { %p477_p0 = por %p476_p13, %p475_p12 }
  0x1f   :  { %p478_p1 = pnand %p477_p0, %p471_p11 }
  0x21   :  { %481 = shalt.err (!%p478_p1)
}
  0x22   :  { %33 = dma.hbm_to_vmem [thread:$0]  %s592_s1, 256, %s28_s24, [#allocation6], %s511_s19, %s511_s19, %s512_s20  }
  0x23   :  { %504 = dma.done.wait [#allocation3], 128  }
  0x24   :  { %505 = vsyncadd [#allocation3], 4294967168 }
  0x25   :  { %506 = dma.done.wait [#allocation6], 256  }
  0x26   :  { %507 = vsyncadd [#allocation6], 4294967040  ;;  %v514_v0 = vmov 0.0   ;;  %vm515_vm0 = vmmov 0   ;;  %v427_v1 = vld [vmem:[#allocation5] sm:$0xff]   ;;  %v428_v2 = vld [vmem:[#allocation5 + $0x8] sm:$0xff]   ;;  %v214_v18 = vlaneseq }
  0x27   :  { %384 = vmatprep.subr.bf16.mxu0 %v514_v0  ;;  %388 = vmatprep.mubr.msk.bf16.mxu0 %vm515_vm0, %v514_v0  ;;  %v429_v3 = vld [vmem:[#allocation2] sm:$0xff]   ;;  %vm64_vm1 = vcmask 261120   ;;  %vm118_vm2 = vcmask 130048   ;;  %s516_s1 = smov 112   ;;  %vm221_vm4 = vcmask 64512   ;;  %s517_s6 = smov 96  }
  0x28   :  { %392 = vmatprep.subr.bf16.mxu1 %v514_v0  ;;  %394 = vmatprep.mubr.msk.bf16.mxu1 %vm515_vm0, %v514_v0  ;;  %v215_v19 = vshrl.u32 %v214_v18, 7  ;;  %v217_v20 = vand.u32 127, %v214_v18  ;;  %vm252_vm5 = vcmask 1043456   ;;  %s518_s7 = smov [#allocation7]  }
  0x29   :  { %385 = vmatpush3.bf16.msra.mxu0 %v427_v1  ;;  %s352_s8 = sshll.u32 %s518_s7, 4  ;;  %s353_s8 = int_to_ptr.vmem [resolvable:$true] %s352_s8 }
  0x2a   :  { %386 = vmatprep.subr.bf16.mxu0 %v514_v0  ;;  %vm218_vm3 = vcmp.le.s32.totalorder %v217_v20, %v215_v19  ;;  %s482_s9 = scalar_lea.vmem %s353_s8, 256  ;;  %p487_p3 = scmp.lt.s32.totalorder %s353_s8, %s353_s8 }
  0x2b   :  { %p483_p2 = scmp.ne.s32.totalorder %s353_s8, %s482_s9  ;;  %p488_p4 = scmp.lt.s32.totalorder %s482_s9, %s482_s9 }
  0x2d   :  { %387 = vmatpush3.bf16.msra.mxu0 %v428_v2  ;;  %p489_p5 = por %p488_p4, %p487_p3 }
  0x2e   :  { %398 = vmatprep.subr.bf16.mxu0 %v514_v0 }
  0x2f   :  { %p490_p6 = pnand %p489_p5, %p483_p2 }
  0x30   :  { %389 = vmatmul.mubr.msk.bf16.vlgmr.msra.gmra.mrb[0].mxu0 %vm64_vm1, %v429_v3 }
  0x31   :  { %400 = vmatprep.mubr.msk.bf16.mxu0 %vm515_vm0, %v514_v0 }
 0x103   :  { %v102_v4 = vpop.f32.mrb[0].mxu0 }
 0x104   :  { %v109_v5 = vmul.f32 5.656854, %v102_v4  ;;  %v113_v6 = vpack.c.bf16 %v102_v4, %v102_v4  ;;  %v390_v7 = vpop.f32.mrb[1].mxu0 }
 0x105   :  { %v105_v8 = vpop.f32.mrb[2].mxu0 }
 0x106   :  { %v110_v9 = vmul.f32 5.656854, %v105_v8  ;;  %v114_v10 = vpack.c.bf16 %v105_v8, %v105_v8  ;;  %v391_v11 = vpop.f32.mrb[3].mxu0  ;;  %v123_v12 = vsel %vm118_vm2, %v113_v6, 0  ;;  %v111_v13 = vpack.c.bf16 %v109_v5, %v109_v5 }
 0x107   :  { %393 = vmatpush3.bf16.xpose.msra.mxu1 %v123_v12 }
 0x108   :  { %116 = vrot.lane.b32.xlu0 %v111_v13, %s516_s1  ;;  %v172_v14 = vsel %vm118_vm2, %v114_v10, 0  ;;  %404 = vmatprep.subr.bf16.mxu1 %v514_v0  ;;  %v112_v15 = vpack.c.bf16 %v110_v9, %v110_v9 }
 0x109   :  { %399 = vmatpush3.bf16.xpose.msra.mxu0 %v172_v14 }
 0x10a   :  { %410 = vmatprep.subr.bf16.mxu0 %v514_v0 }
 0x10c   :  { %166 = vrot.lane.b32.xlu0 %v112_v15, %s516_s1 }
 0x17a   :  { %v117_v16 = vpop.permute.xlu0 %116 }
 0x17b   :  { %395 = vmatmul.mubr.msk.bf16.vlgmr.msra.gmra.mrb[0].mxu1 %vm118_vm2, %v117_v16 }
 0x17c   :  { %406 = vmatprep.mubr.msk.bf16.mxu1 %vm515_vm0, %v514_v0 }
 0x17e   :  { %v167_v17 = vpop.permute.xlu0 %166 }
 0x17f   :  { %401 = vmatmul.mubr.msk.bf16.vlgmr.msra.gmra.mrb[4].mxu0 %vm118_vm2, %v167_v17 }
 0x180   :  { %412 = vmatprep.mubr.msk.bf16.mxu0 %vm515_vm0, %v514_v0 }
 0x24e   :  { %v159_v21 = vpop.f32.mrb[0].mxu1 }
 0x24f   :  { %v219_v22 = vsel %vm218_vm3, %v159_v21, -inf  ;;  %v396_v23 = vpop.f32.mrb[1].mxu1 }
 0x250   :  { %v162_v24 = vpop.f32.mrb[2].mxu1  ;;  %v222_v25 = vsel %vm221_vm4, %v219_v22, -inf }
 0x251   :  { %223 = vmax.xlane.f32.xlu1 %v222_v25  ;;  %v397_v26 = vpop.f32.mrb[3].mxu1 }
 0x252   :  { %v208_v27 = vpop.f32.mrb[4].mxu0 }
 0x253   :  { %v220_v28 = vsel %vm218_vm3, %v208_v27, -inf  ;;  %v402_v29 = vpop.f32.mrb[5].mxu0 }
 0x254   :  { %v211_v30 = vpop.f32.mrb[6].mxu0  ;;  %v225_v31 = vsel %vm221_vm4, %v220_v28, -inf }
 0x255   :  { %226 = vmax.xlane.f32.xlu1 %v225_v31  ;;  %v403_v32 = vpop.f32.mrb[7].mxu0 }
 0x266   :  { %247 = vrot.lane.b32.xlu1 %v113_v6, %s517_s6 }
 0x2de   :  { %v224_v33 = vpop.xlane.xlu1 %223 }
 0x2df   :  { %v228_v34 = vsub.f32 %v219_v22, %v224_v33 }
 0x2e1   :  { %v230_v35 = vmul.f32 1.442695, %v228_v34 }
 0x2e2   :  { %v227_v36 = vpop.xlane.xlu1 %226 }
 0x2e3   :  { %430 = vpow2.f32 %v230_v35  ;;  %v229_v37 = vsub.f32 %v220_v28, %v227_v36 }
 0x2e5   :  { %v232_v38 = vmul.f32 1.442695, %v229_v37 }
 0x2e6   :  { %v248_v39 = vpop.permute.xlu1 %247 }
 0x2e7   :  { %432 = vpow2.f32 %v232_v38  ;;  %v254_v40 = vsel %vm252_vm5, %v248_v39, 0 }
 0x2e8   :  { %405 = vmatpush3.bf16.msra.mxu1 %v254_v40 }
 0x2ed   :  { %v431_v41 = vpop.eup %430 }
 0x2ee   :  { %v234_v42 = vsel %vm221_vm4, %v431_v41, 0.0 }
 0x2ef   :  { %235 = vadd.xlane.f32.xlu0 %v234_v42 }
 0x2f1   :  { %v433_v43 = vpop.eup %432 }
 0x2f2   :  { %v237_v44 = vsel %vm221_vm4, %v433_v43, 0.0 }
 0x2f3   :  { %238 = vadd.xlane.f32.xlu1 %v237_v44 }
 0x304   :  { %297 = vrot.lane.b32.xlu1 %v114_v10, %s517_s6 }
 0x37c   :  { %v236_v45 = vpop.xlane.xlu0 %235 }
 0x37d   :  { %434 = vrcp.f32 %v236_v45 }
 0x380   :  { %v239_v46 = vpop.xlane.xlu1 %238 }
 0x381   :  { %436 = vrcp.f32 %v239_v46 }
 0x384   :  { %v298_v47 = vpop.permute.xlu1 %297 }
 0x385   :  { %v303_v48 = vsel %vm252_vm5, %v298_v47, 0 }
 0x386   :  { %411 = vmatpush3.bf16.msra.mxu0 %v303_v48 }
 0x387   :  { %v435_v49 = vpop.eup %434 }
 0x388   :  { %v241_v50 = vmul.f32 %v435_v49, %v431_v41 }
 0x38a   :  { %v244_v51 = vpack.c.bf16 %v241_v50, %v241_v50 }
 0x38b   :  { %v437_v52 = vpop.eup %436 }
 0x38c   :  { %v243_v53 = vmul.f32 %v437_v52, %v433_v43  ;;  %407 = vmatmul.mubr.msk.bf16.vlgmr.msra.gmra.mrb[4].mxu1 %vm221_vm4, %v244_v51 }
 0x38e   :  { %v245_v54 = vpack.c.bf16 %v243_v53, %v243_v53 }
 0x390   :  { %413 = vmatmul.mubr.msk.bf16.vlgmr.msra.gmra.mrb[8].mxu0 %vm221_vm4, %v245_v54 }
 0x45f   :  { %v290_v55 = vpop.f32.mrb[4].mxu1 }
 0x460   :  { %345 = vst.msk [vmem:[#allocation7] sm:$0xff] %vm118_vm2, %v290_v55  ;;  %v408_v56 = vpop.f32.mrb[5].mxu1 }
 0x461   :  { %v293_v57 = vpop.f32.mrb[6].mxu1 }
 0x462   :  { %v409_v58 = vpop.f32.mrb[7].mxu1 }
 0x463   :  { %v339_v59 = vpop.f32.mrb[8].mxu0 }
 0x464   :  { %346 = vst.msk [vmem:[#allocation7 + $0x8] sm:$0xff] %vm118_vm2, %v339_v59  ;;  %v414_v60 = vpop.f32.mrb[9].mxu0 }
 0x465   :  { %v342_v61 = vpop.f32.mrb[10].mxu0 }
 0x466   :  { %493 = shalt.err (!%p490_p6)
}
 0x467   :  { %s494_s12 = scalar_lea.hbm %s593_s2, 256 }
 0x468   :  { %p495_p7 = scmp.ne.s32.totalorder %s593_s2, %s494_s12  ;;  %p498_p8 = scmp.lt.u32.totalorder %s494_s12, %s593_s2 }
 0x46a   :  { %p500_p9 = pnand %p498_p8, %p495_p7 }
 0x46c   :  { %503 = shalt.err (!%p500_p9)
}
 0x46d   :  { %s519_s17 = smov 128   ;;  %s520_s18 = smov 8   ;;  %v415_v62 = vpop.f32.mrb[11].mxu0 }
 0x46e   :  { %358 = dma.vmem_to_hbm [thread:$0]  %s353_s8, 256, %s593_s2, [#allocation4], %s519_s17, %s519_s17, %s520_s18  }
 0x46f   :  { %508 = dma.done.wait [#allocation4], 256  }
 0x470   :  { %509 = vsyncadd [#allocation4], 4294967040 }
 0x471   :  { %362 = vsyncpa [#allocation3], 1 }
 0x472   :  { %363 = vsyncpa [#allocation6], 1 }
 0x473   :  { %364 = vsyncpa [#allocation4], 1 }

</bundles_post_ra>
